<compile_context>
chip_gen: v7x
topology: tpu7x:2x2x1
jax: 0.10.0
libtpu: 0.0.40
codegen_flags: <defaults>
</compile_context>

<pallas_src>
import math
import numpy as np
import jax
import jax.numpy as jnp
from jax import lax
from jax.experimental import pallas as pl
from jax.experimental.pallas import tpu as pltpu

INF = 100000000


# ----------------------------- config (deterministic, in-script) ------------
class cfg:
    num_classes = 8
    fpn_stride = [8, 16]
    num_candidate_per_level = 9
    focal_loss_gamma = 2.0
    focal_loss_alpha = 0.25
    cls_loss_weight = 1.0
    reg_loss_weight = 2.0
    cen_loss_weight = 1.0
    anchor_scale = 4


# ----------------------------- host-side utils (numpy, target generation) ---
def compute_anchors(scales):
    anchors = []
    for i, (h, w) in enumerate(scales):
        stride = cfg.fpn_stride[i]
        size = cfg.anchor_scale * stride
        ys = (np.arange(h, dtype=np.float32) + 0.5) * stride
        xs = (np.arange(w, dtype=np.float32) + 0.5) * stride
        cy, cx = np.meshgrid(ys, xs, indexing="ij")
        cx = cx.reshape(-1)
        cy = cy.reshape(-1)
        a = np.stack([cx - size / 2, cy - size / 2, cx + size / 2, cy + size / 2], axis=-1)
        anchors.append(a.astype(np.float32))
    return anchors


def compute_iou_xyxy(a, b):
    lt = np.maximum(a[:, None, :2], b[None, :, :2])
    rb = np.minimum(a[:, None, 2:], b[None, :, 2:])
    wh = np.clip(rb - lt, 0.0, None)
    inter = wh[..., 0] * wh[..., 1]
    area_a = (a[:, 2] - a[:, 0]) * (a[:, 3] - a[:, 1])
    area_b = (b[:, 2] - b[:, 0]) * (b[:, 3] - b[:, 1])
    union = area_a[:, None] + area_b[None, :] - inter
    return inter / np.maximum(union, 1e-6)


def reg_encode(anchors, gts):
    aw = anchors[:, 2] - anchors[:, 0]
    ah = anchors[:, 3] - anchors[:, 1]
    ax = (anchors[:, 0] + anchors[:, 2]) * 0.5
    ay = (anchors[:, 1] + anchors[:, 3]) * 0.5
    gw = gts[:, 2] - gts[:, 0]
    gh = gts[:, 3] - gts[:, 1]
    gx = (gts[:, 0] + gts[:, 2]) * 0.5
    gy = (gts[:, 1] + gts[:, 3]) * 0.5
    return np.stack(
        [(gx - ax) / aw, (gy - ay) / ah, np.log(gw / aw), np.log(gh / ah)], axis=-1
    ).astype(np.float32)


def reduce_mean(x):
    # TODO(synk): single-device identity; multi-device all-reduce-mean not needed here.
    return float(x)


def unmap_1d(data, inds, fill=0):
    ret = np.full((inds.shape[0],), fill, dtype=data.dtype)
    ret[inds.astype(bool)] = data
    return ret


def unmap_2d(data, inds, fill=0.0):
    ret = np.full((inds.shape[0],) + data.shape[1:], fill, dtype=data.dtype)
    ret[inds.astype(bool), :] = data
    return ret


def compute_valid_flag(fin_img_shape, scales):
    out = []
    for i, scale in enumerate(scales):
        stride = cfg.fpn_stride[i]
        h_fpn, w_fpn = scale
        h_valid = math.ceil(fin_img_shape[0] / stride)
        w_valid = math.ceil(fin_img_shape[1] / stride)
        y_valid = np.zeros((h_fpn,), dtype=bool)
        x_valid = np.zeros((w_fpn,), dtype=bool)
        x_valid[:w_valid] = True
        y_valid[:h_valid] = True
        yy, xx = np.meshgrid(y_valid, x_valid, indexing="ij")
        out.append(yy.reshape(-1) & xx.reshape(-1))
    return out


def compute_targets(scales, gt_bboxes, gt_labels, fin_img_shape):
    # TODO(synk): target assignment is dynamic-shape (topk / boolean compaction /
    # scatter); done host-side in numpy, mirroring the PyTorch reference exactly.
    cls_targets, reg_targets = [], []
    anchors_per_level = compute_anchors(scales)
    num_anchors_per_level = [a.shape[0] for a in anchors_per_level]
    anchors = np.concatenate(anchors_per_level, axis=0)
    batch_valid_flags = [compute_valid_flag(s, scales) for s in fin_img_shape]
    out_valid_flags = []

    for i, gt_bbox in enumerate(gt_bboxes):
        num_gt = gt_bbox.shape[0]
        vf_levels = batch_valid_flags[i]
        num_valid_per_level = [int(v.sum()) for v in vf_levels]
        vf = np.concatenate(vf_levels)
        valid_anchors = anchors[vf]
        num_valid = valid_anchors.shape[0]

        anchors_cx = (valid_anchors[:, 0] + valid_anchors[:, 2]) * 0.5
        anchors_cy = (valid_anchors[:, 1] + valid_anchors[:, 3]) * 0.5
        anchors_center = np.stack([anchors_cx, anchors_cy], axis=-1)
        gt_cx = (gt_bbox[:, 0] + gt_bbox[:, 2]) * 0.5
        gt_cy = (gt_bbox[:, 1] + gt_bbox[:, 3]) * 0.5
        gt_center = np.stack([gt_cx, gt_cy], axis=-1)
        distance = np.sqrt(((anchors_center[:, None, :] - gt_center[None, :, :]) ** 2).sum(-1))

        candidate_ids = []
        start = 0
        for n in num_valid_per_level:
            d = distance[start:start + n]
            k = min(n, cfg.num_candidate_per_level)
            ids = np.argsort(d, axis=0, kind="stable")[:k]
            candidate_ids.append(ids + start)
            start += n
        candidate_ids = np.concatenate(candidate_ids, axis=0)

        overlaps = compute_iou_xyxy(valid_anchors, gt_bbox)
        candidate_overlaps = overlaps[candidate_ids, np.arange(num_gt)[None, :]]
        overlap_mean = candidate_overlaps.mean(0)
        overlap_std = candidate_overlaps.std(0, ddof=1)
        thr = overlap_mean + overlap_std
        is_pos = candidate_overlaps >= thr[None, :]

        cand_cx = anchors_cx[candidate_ids.reshape(-1)].reshape(-1, num_gt)
        cand_cy = anchors_cy[candidate_ids.reshape(-1)].reshape(-1, num_gt)
        l = cand_cx - gt_bbox[:, 0][None]
        t = cand_cy - gt_bbox[:, 1][None]
        r = gt_bbox[:, 2][None] - cand_cx
        b = gt_bbox[:, 3][None] - cand_cy
        dist4 = np.stack([l, t, r, b], axis=-1)
        is_inside = dist4.min(axis=-1) > 0.01
        is_pos = is_pos & is_inside

        cand_flat = candidate_ids + np.arange(num_gt)[None, :] * num_valid
        overlaps_inf = np.full(num_gt * num_valid, -INF, dtype=np.float32)
        overlaps_t_flat = overlaps.T.reshape(-1)
        index = cand_flat.reshape(-1)[is_pos.reshape(-1)]
        overlaps_inf[index] = overlaps_t_flat[index]
        overlaps_inf = overlaps_inf.reshape(num_gt, -1).T

        max_overlaps = overlaps_inf.max(axis=1)
        argmax_overlaps = overlaps_inf.argmax(axis=1)
        assigned_gt_inds = np.zeros((num_valid,), dtype=np.int64)
        m = max_overlaps != -INF
        assigned_gt_inds[m] = argmax_overlaps[m] + 1

        assigned_labels = np.full((num_valid,), cfg.num_classes, dtype=np.int64)
        pos_inds = np.nonzero(assigned_gt_inds > 0)[0]
        if pos_inds.size > 0:
            assigned_labels[pos_inds] = gt_labels[i][assigned_gt_inds[pos_inds] - 1]
        cls_targets.append(unmap_1d(assigned_labels, vf, cfg.num_classes))

        if pos_inds.size > 0:
            pos_gt = gt_bbox[assigned_gt_inds[pos_inds] - 1, :]
            pos_anchor = valid_anchors[pos_inds]
            pos_reg = reg_encode(pos_anchor, pos_gt)
        else:
            pos_reg = np.zeros((0, 4), np.float32)
        valid_reg = np.zeros_like(valid_anchors)
        valid_reg[pos_inds, :] = pos_reg
        reg_targets.append(unmap_2d(valid_reg, vf))
        out_valid_flags.append(vf)

    return cls_targets, reg_targets, anchors, out_valid_flags, num_anchors_per_level


# ----------------------------- Pallas kernels -------------------------------
MAX_TILE_LANES = 2048   # max anchors (lanes) per focal grid step
CHUNK_LANES = 512       # lanes evaluated per unrolled inner chunk


def _focal_tiling(N):
    """Pick (tile, num_tiles, Npad): tile is a multiple of 128 (and of CHUNK_LANES
    when larger), capped at MAX_TILE_LANES.  Keep >= 2 tiles whenever possible so
    the 'parallel' grid axis can be sharded across both v7x TensorCores."""
    ngrp = -(-N // 128)
    if ngrp <= 2 * (CHUNK_LANES // 128):
        tiles = 2 if ngrp >= 2 else 1
        tile = (-(-ngrp // tiles)) * 128
    else:
        total_chunks = -(-N // CHUNK_LANES)
        tile_chunks = min(MAX_TILE_LANES // CHUNK_LANES, max(1, -(-total_chunks // 2)))
        tile = tile_chunks * CHUNK_LANES
        tiles = -(-N // tile)
    return tile, tiles, tiles * tile


def _fpow(x, g):
    # pow with a python-float exponent; repeated multiply for integral g >= 1
    if float(g).is_integer() and int(g) >= 1:
        r = x
        for _ in range(int(g) - 1):
            r = r * x
        return r
    return x ** g


def _make_focal_kernel(C, C_pad, tile, chunk):
    n_chunks = tile // chunk
    n_folds = chunk // 128
    alpha = cfg.focal_loss_alpha
    gamma = cfg.focal_loss_gamma

    def kernel(logits_ref, tgt_ref, out_ref):
        # class index per sublane (created once per step; reused across chunks)
        cls_idx = lax.broadcasted_iota(jnp.int32, (C_pad, chunk), 0)
        acc = None
        for c in range(n_chunks):
            lo, hi = c * chunk, (c + 1) * chunk
            x = logits_ref[:, lo:hi].astype(jnp.float32)   # (C_pad, chunk)
            t = tgt_ref[:, lo:hi]                          # (1, chunk) int32, -1 = ignore

            # numerically-stable sigmoid / log-sigmoid (EUP: exp, log, approx rcp)
            e = jnp.exp(-jnp.abs(x))
            log1pe = jnp.log(1.0 + e)
            log_p = -(log1pe + jnp.maximum(-x, 0.0))       # log(sigmoid(x))
            log_1mp = -(log1pe + jnp.maximum(x, 0.0))      # log(1 - sigmoid(x))
            inv = pl.reciprocal(1.0 + e, approx=True)
            p = jnp.where(x >= 0, 1.0, e) * inv            # sigmoid(x)
            one_mp = jnp.where(x >= 0, e, 1.0) * inv       # 1 - sigmoid(x)

            # unified pos/neg focal branch (weight already folded into targets:
            # invalid anchors carry target = -1 and contribute nothing)
            pos = t == cls_idx                             # (C_pad, chunk)
            active = t >= 0                                # (1, chunk)
            mod = jnp.where(pos, one_mp, p)
            logt = jnp.where(pos, log_p, log_1mp)
            a_t = jnp.where(pos, alpha, 1.0 - alpha)
            loss = jnp.where(active, -a_t * _fpow(mod, gamma) * logt, 0.0)
            if C_pad != C:   # only when class rows are padded (not the case for C=8)
                loss = jnp.where(cls_idx < C, loss, 0.0)

            # tree-fold the lane axis to an (C_pad, 128) partial (pure VALU adds)
            parts = [loss[:, j * 128:(j + 1) * 128] for j in range(n_folds)]
            while len(parts) > 1:
                nxt = [parts[k] + parts[k + 1] for k in range(0, len(parts) - 1, 2)]
                if len(parts) % 2:
                    nxt.append(parts[-1])
                parts = nxt
            acc = parts[0] if acc is None else acc + parts[0]
        out_ref[...] = acc
    return kernel


def focal_loss_pallas(logits_cn, targets_row, tile):
    """logits_cn: (C, Npad) device array, class-major / anchor-on-lane, tail-padded.
       targets_row: (1, Npad) int32 numpy; -1 marks invalid/padded anchors."""
    C, Npad = logits_cn.shape
    C_pad = max(8, ((C + 7) // 8) * 8)
    if C_pad != C:
        logits_cn = jnp.pad(logits_cn, ((0, C_pad - C), (0, 0)))
    num_tiles = Npad // tile
    chunk = min(CHUNK_LANES, tile)
    kernel = _make_focal_kernel(C, C_pad, tile, chunk)

    partials = pl.pallas_call(
        kernel,
        out_shape=jax.ShapeDtypeStruct((num_tiles * C_pad, 128), jnp.float32),
        grid=(num_tiles,),
        in_specs=[
            pl.BlockSpec((C_pad, tile), lambda i: (0, i)),
            pl.BlockSpec((1, tile), lambda i: (0, i)),
        ],
        out_specs=pl.BlockSpec((C_pad, 128), lambda i: (i, 0)),
        compiler_params=pltpu.CompilerParams(dimension_semantics=("parallel",)),
    )(logits_cn, jnp.asarray(targets_row))
    return jnp.sum(partials)


# packed-row layout for the positive-sample kernel host block (sublane axis)
_ROW_ANC = 0    # rows 0..3  : anchor boxes (x1,y1,x2,y2)
_ROW_RT = 4     # rows 4..7  : target reg deltas
_ROW_MASK = 8   # row 8      : 1.0 for real positives, 0.0 for padding
_PACK_ROWS = 16


def _pos_kernel(host_ref, rp_ref, cen_ref, giou_out, cen_out, cent_sum_out):
    h = host_ref[...]                              # (16, Ppad) host constants
    anc = h[_ROW_ANC:_ROW_ANC + 4]                 # (4, Ppad)
    rt = h[_ROW_RT:_ROW_RT + 4]                    # (4, Ppad)
    mask = h[_ROW_MASK:_ROW_MASK + 1]              # (1, Ppad)
    rp = rp_ref[...]                               # (4, Ppad) predicted reg deltas
    x = cen_ref[...]                               # (1, Ppad) centerness logits

    aw = anc[2:3] - anc[0:1]
    ah = anc[3:4] - anc[1:2]
    ax = (anc[0:1] + anc[2:3]) * 0.5
    ay = (anc[1:2] + anc[3:4]) * 0.5

    def decode(delta):
        px = ax + delta[0:1] * aw
        py = ay + delta[1:2] * ah
        pw = aw * jnp.exp(delta[2:3])
        ph = ah * jnp.exp(delta[3:4])
        return px - pw * 0.5, py - ph * 0.5, px + pw * 0.5, py + ph * 0.5

    px1, py1, px2, py2 = decode(rp)   # decoded predicted boxes
    tx1, ty1, tx2, ty2 = decode(rt)   # decoded target boxes

    # centerness targets (anchor centers vs. decoded target boxes); clamp the
    # ratio product at 0 to guard against encode->decode rounding at borders.
    l = ax - tx1
    t = ay - ty1
    r = tx2 - ax
    b = ty2 - ay
    ratio = (jnp.minimum(l, r) / jnp.maximum(l, r)) * (jnp.minimum(t, b) / jnp.maximum(t, b))
    cen_t = jnp.sqrt(jnp.maximum(ratio, 0.0))

    # GIoU loss between predicted and target boxes
    ix1 = jnp.maximum(px1, tx1)
    iy1 = jnp.maximum(py1, ty1)
    ix2 = jnp.minimum(px2, tx2)
    iy2 = jnp.minimum(py2, ty2)
    iw = jnp.maximum(ix2 - ix1, 0.0)
    ih = jnp.maximum(iy2 - iy1, 0.0)
    overlap = iw * ih
    ap = (px2 - px1) * (py2 - py1)
    ag = (tx2 - tx1) * (ty2 - ty1)
    union = ap + ag - overlap + 1.0
    ious = overlap / union
    ex1 = jnp.minimum(px1, tx1)
    ey1 = jnp.minimum(py1, ty1)
    ex2 = jnp.maximum(px2, tx2)
    ey2 = jnp.maximum(py2, ty2)
    ew = jnp.maximum(ex2 - ex1, 0.0)
    eh = jnp.maximum(ey2 - ey1, 0.0)
    enclose = ew * eh + 1.0
    gious = ious - (enclose - union) / enclose
    giou_loss = (1.0 - gious) * cen_t * mask

    # centerness BCE with logits: max(x,0) - x*t + log(1 + exp(-|x|))
    bce = (jnp.maximum(x, 0.0) - x * cen_t + jnp.log(1.0 + jnp.exp(-jnp.abs(x)))) * mask

    giou_out[0, 0] = jnp.sum(giou_loss)
    cen_out[0, 0] = jnp.sum(bce)
    cent_sum_out[0, 0] = jnp.sum(cen_t * mask)


def pos_losses_pallas(anchors_pos, reg_targets_pos, reg_preds_cn, cen_preds_row, pos_inds):
    P = int(pos_inds.shape[0])
    # power-of-two bucket (>=128) so the pallas_call shape (and compile) is
    # stable as the positive count drifts across 128 boundaries.
    Ppad = max(128, 1 << (P - 1).bit_length())

    # single host-constant block (anchors, reg targets, mask); padded columns
    # carry a dummy valid anchor (0,0,8,8) with zero deltas so every
    # intermediate stays finite, then get zeroed by the mask row.
    host = np.zeros((_PACK_ROWS, Ppad), np.float32)
    host[_ROW_ANC + 2:_ROW_ANC + 4, :] = 8.0
    host[_ROW_ANC:_ROW_ANC + 4, :P] = np.asarray(anchors_pos, np.float32).T
    host[_ROW_RT:_ROW_RT + 4, :P] = np.asarray(reg_targets_pos, np.float32).T
    host[_ROW_MASK, :P] = 1.0

    # device-side predictions: single padded-index gather each (no .at[].set)
    idx = np.zeros((Ppad,), np.int32)
    idx[:P] = pos_inds.astype(np.int32)
    idx_d = jnp.asarray(idx)
    rp = jnp.take(reg_preds_cn, idx_d, axis=1)     # (4, Ppad)
    cp = jnp.take(cen_preds_row, idx_d, axis=1)    # (1, Ppad)

    outs = pl.pallas_call(
        _pos_kernel,
        out_shape=(
            jax.ShapeDtypeStruct((1, 1), jnp.float32),
            jax.ShapeDtypeStruct((1, 1), jnp.float32),
            jax.ShapeDtypeStruct((1, 1), jnp.float32),
        ),
        grid=(1,),
        in_specs=[
            pl.BlockSpec((_PACK_ROWS, Ppad), lambda i: (0, 0)),
            pl.BlockSpec((4, Ppad), lambda i: (0, 0)),
            pl.BlockSpec((1, Ppad), lambda i: (0, 0)),
        ],
        out_specs=(
            pl.BlockSpec(memory_space=pltpu.MemorySpace.SMEM),
            pl.BlockSpec(memory_space=pltpu.MemorySpace.SMEM),
            pl.BlockSpec(memory_space=pltpu.MemorySpace.SMEM),
        ),
        compiler_params=pltpu.CompilerParams(dimension_semantics=("arbitrary",)),
    )(jnp.asarray(host), rp, cp)
    return outs[0][0, 0], outs[1][0, 0], outs[2][0, 0]


# ----------------------------- AtssLoss.forward (glue + kernels) ------------
def atss_loss_forward(cls_preds, reg_preds, cen_preds, gt_bboxes, gt_labels, fin_img_shape):
    batch_size = cls_preds[0].shape[0]
    scales = [tuple(cp.shape[-2:]) for cp in cls_preds]
    num_levels = len(scales)
    C = cfg.num_classes

    gt_bboxes_np = [np.asarray(g, dtype=np.float32) for g in gt_bboxes]
    gt_labels_np = [np.asarray(l, dtype=np.int64) for l in gt_labels]

    cls_t, reg_t, anchors, bvf, num_anchors_per_level = compute_targets(
        scales, gt_bboxes_np, gt_labels_np, fin_img_shape)

    # arrange targets level-first (matching the order of the concatenated preds)
    splits = np.cumsum(num_anchors_per_level)[:-1]
    anchors_split = np.split(anchors, splits, axis=0)
    anchors_level_first = np.concatenate(
        [np.concatenate([anchors_split[i] for _ in range(batch_size)]) for i in range(num_levels)])
    cls_split = [np.split(c, splits) for c in cls_t]
    reg_split = [np.split(r, splits, axis=0) for r in reg_t]
    vf_split = [np.split(v, splits) for v in bvf]
    cls_level_first = np.concatenate(
        [np.concatenate([cs[i] for cs in cls_split]) for i in range(num_levels)])
    reg_level_first = np.concatenate(
        [np.concatenate([rs[i] for rs in reg_split]) for i in range(num_levels)])
    vf_level_first = np.concatenate(
        [np.concatenate([vs[i] for vs in vf_split]) for i in range(num_levels)])

    # total anchors (lanes) and focal tiling (>= 2 tiles when possible for v7x)
    N = int(sum(batch_size * h * w for (h, w) in scales))
    tile, _, Npad = _focal_tiling(N)

    # --- classification logits in native class-major layout: (C, Npad).
    # NCHW (B,C,H,W) -> (C, B*H*W) per level is just a cheap B<->C swap (minor
    # H*W axis untouched); the zero lane-tail is appended in the SAME
    # concatenate, so there is no standalone full-tensor pad pass.
    cls_parts = [jnp.transpose(cp.reshape(cp.shape[0], C, -1), (1, 0, 2)).reshape(C, -1)
                 for cp in cls_preds]
    if Npad > N:
        cls_parts.append(jnp.zeros((C, Npad - N), cls_preds[0].dtype))
    cls_preds_cn = jnp.concatenate(cls_parts, axis=1)

    # reg / centerness preds in the same class-major layout (4 / 1 rows) so the
    # pos path gathers along the lane axis with a padded index vector
    reg_preds_cn = jnp.concatenate(
        [jnp.transpose(rp.reshape(rp.shape[0], 4, -1), (1, 0, 2)).reshape(4, -1)
         for rp in reg_preds], axis=1)
    cen_preds_row = jnp.concatenate(
        [jnp.transpose(cn.reshape(cn.shape[0], 1, -1), (1, 0, 2)).reshape(1, -1)
         for cn in cen_preds], axis=1)

    pos_inds = np.nonzero((cls_level_first >= 0) & (cls_level_first != cfg.num_classes))[0]
    num_pos = reduce_mean(float(pos_inds.size))   # host scalar (from numpy targets; no device sync)

    # targets with the validity weight folded in: invalid anchors -> -1 (zero loss).
    tgt_row = np.full((1, Npad), -1, np.int32)
    tgt_row[0, :N] = np.where(vf_level_first.astype(bool),
                              cls_level_first.astype(np.int32), -1)

    cls_loss_sum = focal_loss_pallas(cls_preds_cn, tgt_row, tile)
    cls_loss = cfg.cls_loss_weight * cls_loss_sum / max(num_pos, 1.0)

    if num_pos > 0:
        anchors_pos = anchors_level_first[pos_inds]
        reg_targets_pos = reg_level_first[pos_inds]
        giou_w_sum, cen_bce_sum, cen_t_sum = pos_losses_pallas(
            anchors_pos, reg_targets_pos, reg_preds_cn, cen_preds_row, pos_inds)
        # normalizations stay on-device (no blocking host round-trip mid-forward)
        reg_loss = cfg.reg_loss_weight * giou_w_sum / jnp.maximum(cen_t_sum, 1e-6)
        cen_loss = cfg.cen_loss_weight * cen_bce_sum / num_pos
    else:
        reg_loss = jnp.zeros((), jnp.float32)
        cen_loss = jnp.zeros((), jnp.float32)

    return dict(cls_loss=cls_loss, reg_loss=reg_loss, cen_loss=cen_loss)


# ----------------------------- main ------------------------------------------
if __name__ == "__main__":
    key = jax.random.PRNGKey(0)
    k1, k2, k3, k4, k5, k6 = jax.random.split(key, 6)

    B = 2
    level_shapes = [(8, 8), (4, 4)]  # strides 8, 16 -> 64x64 image

    cls_preds = [
        0.1 * jax.random.normal(k1, (B, cfg.num_classes, 8, 8), jnp.float32),
        0.1 * jax.random.normal(k2, (B, cfg.num_classes, 4, 4), jnp.float32),
    ]
    reg_preds = [
        0.1 * jax.random.normal(k3, (B, 4, 8, 8), jnp.float32),
        0.1 * jax.random.normal(k4, (B, 4, 4, 4), jnp.float32),
    ]
    cen_preds = [
        0.1 * jax.random.normal(k5, (B, 1, 8, 8), jnp.float32),
        0.1 * jax.random.normal(k6, (B, 1, 4, 4), jnp.float32),
    ]

    gt_bboxes = [
        np.array([[8.0, 8.0, 40.0, 40.0],
                  [20.0, 24.0, 56.0, 60.0],
                  [4.0, 36.0, 28.0, 60.0]], dtype=np.float32),
        np.array([[10.0, 6.0, 50.0, 46.0],
                  [30.0, 30.0, 62.0, 62.0]], dtype=np.float32),
    ]
    gt_labels = [
        np.array([0, 3, 5], dtype=np.int64),
        np.array([2, 7], dtype=np.int64),
    ]
    fin_img_shape = [(64, 64), (64, 64)]

    losses = atss_loss_forward(cls_preds, reg_preds, cen_preds,
                               gt_bboxes, gt_labels, fin_img_shape)
    for v in losses.values():
        jax.block_until_ready(v)
    assert all(bool(jnp.isfinite(v)) for v in losses.values())
    print("KERNEL_OK")
</pallas_src>

<mosaic_0001>
module attributes {stable_mosaic.version = 11 : i64} {
  func.func @kernel(%arg0: i32, %arg1: memref<8x128xf32, #tpu.memory_space<vmem>>, %arg2: memref<1x128xi32, #tpu.memory_space<vmem>>, %arg3: memref<8x128xf32, #tpu.memory_space<vmem>>) attributes {dimension_semantics = [#tpu.dimension_semantics<parallel>], iteration_bounds = array<i64: 2>, scalar_prefetch = 0 : i64, scratch_operands = 0 : i64, tpu.core_type = #tpu.core_type<tc>, window_params = [{transform_indices = @transform_0, window_bounds = array<i64: 8, 128>}, {transform_indices = @transform_1, window_bounds = array<i64: 1, 128>}, {transform_indices = @transform_2, window_bounds = array<i64: 8, 128>}]} {
    %0 = tpu.iota {dimensions = array<i32: 0>} : vector<8x128xi32>
    %c0 = arith.constant 0 : index
    %c0_0 = arith.constant 0 : index
    %1 = vector.load %arg1[%c0, %c0_0] : memref<8x128xf32, #tpu.memory_space<vmem>>, vector<8x128xf32>
    %c0_1 = arith.constant 0 : index
    %c0_2 = arith.constant 0 : index
    %2 = vector.load %arg2[%c0_1, %c0_2] : memref<1x128xi32, #tpu.memory_space<vmem>>, vector<1x128xi32>
    %3 = math.absf %1 : vector<8x128xf32>
    %cst = arith.constant 0.000000e+00 : f32
    %4 = vector.broadcast %cst : f32 to vector<8x128xf32>
    %5 = arith.subf %4, %3 : vector<8x128xf32>
    %6 = math.exp %5 : vector<8x128xf32>
    %cst_3 = arith.constant 1.000000e+00 : f32
    %7 = vector.broadcast %cst_3 : f32 to vector<8x128xf32>
    %8 = arith.addf %7, %6 : vector<8x128xf32>
    %9 = math.log %8 : vector<8x128xf32>
    %cst_4 = arith.constant 0.000000e+00 : f32
    %10 = vector.broadcast %cst_4 : f32 to vector<8x128xf32>
    %11 = arith.subf %10, %1 : vector<8x128xf32>
    %cst_5 = arith.constant 0.000000e+00 : f32
    %12 = vector.broadcast %cst_5 : f32 to vector<8x128xf32>
    %13 = arith.maximumf %11, %12 : vector<8x128xf32>
    %14 = arith.addf %9, %13 : vector<8x128xf32>
    %cst_6 = arith.constant 0.000000e+00 : f32
    %15 = vector.broadcast %cst_6 : f32 to vector<8x128xf32>
    %16 = arith.subf %15, %14 : vector<8x128xf32>
    %cst_7 = arith.constant 0.000000e+00 : f32
    %17 = vector.broadcast %cst_7 : f32 to vector<8x128xf32>
    %18 = arith.maximumf %1, %17 : vector<8x128xf32>
    %19 = arith.addf %9, %18 : vector<8x128xf32>
    %cst_8 = arith.constant 0.000000e+00 : f32
    %20 = vector.broadcast %cst_8 : f32 to vector<8x128xf32>
    %21 = arith.subf %20, %19 : vector<8x128xf32>
    %cst_9 = arith.constant 1.000000e+00 : f32
    %22 = vector.broadcast %cst_9 : f32 to vector<8x128xf32>
    %23 = arith.addf %22, %6 : vector<8x128xf32>
    %24 = tpu.reciprocal %23 {approx = true} : vector<8x128xf32> -> vector<8x128xf32>
    %cst_10 = arith.constant 0.000000e+00 : f32
    %25 = vector.broadcast %cst_10 : f32 to vector<8x128xf32>
    %26 = arith.cmpf oge, %1, %25 : vector<8x128xf32>
    %cst_11 = arith.constant 1.000000e+00 : f32
    %27 = vector.broadcast %cst_11 : f32 to vector<8x128xf32>
    %28 = arith.select %26, %27, %6 : vector<8x128xi1>, vector<8x128xf32>
    %29 = arith.mulf %28, %24 : vector<8x128xf32>
    %cst_12 = arith.constant 0.000000e+00 : f32
    %30 = vector.broadcast %cst_12 : f32 to vector<8x128xf32>
    %31 = arith.cmpf oge, %1, %30 : vector<8x128xf32>
    %cst_13 = arith.constant 1.000000e+00 : f32
    %32 = vector.broadcast %cst_13 : f32 to vector<8x128xf32>
    %33 = arith.select %31, %6, %32 : vector<8x128xi1>, vector<8x128xf32>
    %34 = arith.mulf %33, %24 : vector<8x128xf32>
    %35 = vector.broadcast %2 : vector<1x128xi32> to vector<8x128xi32>
    %36 = arith.cmpi eq, %35, %0 : vector<8x128xi32>
    %c0_i32 = arith.constant 0 : i32
    %37 = vector.broadcast %c0_i32 : i32 to vector<1x128xi32>
    %38 = arith.cmpi sge, %2, %37 : vector<1x128xi32>
    %39 = arith.select %36, %34, %29 : vector<8x128xi1>, vector<8x128xf32>
    %40 = arith.select %36, %16, %21 : vector<8x128xi1>, vector<8x128xf32>
    %cst_14 = arith.constant 2.500000e-01 : f32
    %cst_15 = arith.constant 7.500000e-01 : f32
    %41 = vector.broadcast %cst_14 : f32 to vector<8x128xf32>
    %42 = vector.broadcast %cst_15 : f32 to vector<8x128xf32>
    %43 = arith.select %36, %41, %42 : vector<8x128xi1>, vector<8x128xf32>
    %cst_16 = arith.constant 0.000000e+00 : f32
    %44 = vector.broadcast %cst_16 : f32 to vector<8x128xf32>
    %45 = arith.subf %44, %43 : vector<8x128xf32>
    %46 = arith.mulf %39, %39 : vector<8x128xf32>
    %47 = arith.mulf %45, %46 : vector<8x128xf32>
    %48 = arith.mulf %47, %40 : vector<8x128xf32>
    %cst_17 = arith.constant 0.000000e+00 : f32
    %49 = vector.shape_cast %38 : vector<1x128xi1> to vector<1x128xi1>
    %50 = vector.broadcast %49 : vector<1x128xi1> to vector<8x128xi1>
    %51 = vector.broadcast %cst_17 : f32 to vector<8x128xf32>
    %52 = arith.select %50, %48, %51 : vector<8x128xi1>, vector<8x128xf32>
    %c0_18 = arith.constant 0 : index
    %c0_19 = arith.constant 0 : index
    %53 = vector.load %arg3[%c0_18, %c0_19] : memref<8x128xf32, #tpu.memory_space<vmem>>, vector<8x128xf32>
    tpu.vector_store %arg3[%c0_18, %c0_19], %52 {strides = array<i32>} : memref<8x128xf32, #tpu.memory_space<vmem>>, vector<8x128xf32>,
    return
  }
  func.func @transform_0(%arg0: i32) -> (i32, i32) {
    %c0_i32 = arith.constant 0 : i32
    %c0_i32_0 = arith.constant 0 : i32
    return %c0_i32, %arg0 : i32, i32
  }
  func.func @transform_1(%arg0: i32) -> (i32, i32) {
    %c0_i32 = arith.constant 0 : i32
    %c0_i32_0 = arith.constant 0 : i32
    return %c0_i32, %arg0 : i32, i32
  }
  func.func @transform_2(%arg0: i32) -> (i32, i32) {
    %c0_i32 = arith.constant 0 : i32
    %c0_i32_0 = arith.constant 0 : i32
    return %arg0, %c0_i32 : i32, i32
  }
}

</mosaic_0001>

<bundles_post_ra>
// kernel: tpu_custom_call.1
= control target key start
LH: loop header
LB: loop body
LE: loop exit
PB: predicated region body
PF: predicated region fallthrough
CT: control target
= control target key end

     0   :  { %7 = vsyncpa [#allocation3], 0  ;;  %s667_s0 = inlined_call_operand.hbm [shape: f32[8,256], index: 0, kind: input, shape index: {}]   ;;  %s668_s1 = inlined_call_operand.vmem [shape: s32[1,256], index: 1, kind: input, shape index: {}]   ;;  %s669_s2 = inlined_call_operand.hbm [shape: f32[16,128], index: 2, kind: output, shape index: {}]  }
   0x1   :  { %9 = vsyncpa [#allocation3 + $0x1], 0 }
   0x2   :  { %10 = vsyncpa [#allocation4], 0 }
   0x3   :  { %12 = vsyncpa [#allocation4 + $0x1], 0  ;;  %s494_s9 = smov 0   ;;  %s496_s10 = smov 0  }
   0x4   :  { %s498_s11 = smov 0   ;;  %s500_s12 = smov 0  }
   0x5 LB: > { %s515_s13 = sadd.s32 4294967295, %s473_s12   ;;  %s311_s14 = sadd.s32 4294967294, %s473_s12   ;;  %s473_s12 = sphi %s500_s12, %s684_s12   ;;  %s469_s11 = sphi %s498_s11, %s683_s11   ;;  %s465_s10 = sphi %s496_s10, %s682_s10   ;;  %s461_s9 = sphi %s494_s9, %s681_s9  }
   0x6   : > { %s519_s15 = sadd.s32 1, %s473_s12   ;;  %s25_s16 = sadd.s32 1, %s469_s11 }
   0x7   : > { %s22_s17 = ssub.s32 %s473_s12, %s519_s15  ;;  %p32_p0 = scmp.ne.s32.totalorder %s469_s11, %s465_s10 }
   0x8   : > { %p23_p1 = scmp.eq.s32.totalorder %s22_s17, 0  ;;  %p33_p2 = scmp.eq.s32.totalorder %s473_s12, 0 }
   0x9   : > { %p38_p3 = scmp.ne.s32.totalorder %s465_s10, %s461_s9  ;;  %p39_p4 = scmp.eq.s32.totalorder %s515_s13, 0 }
   0xa   : > { %s531_s18 = scalar_select %p23_p1, %s469_s11, %s25_s16  }
   0xb   : > { %p533_p5 = por %p33_p2, %p32_p0  ;;  %p537_p6 = por %p39_p4, %p38_p3 }
   0xc   : > { %p88_p7 = scmp.eq.s32.totalorder %s515_s13, 1  ;;  %p94_p8 = scmp.eq.s32.totalorder %s311_s14, 1 }
   0xd   : > { %p335_p10 = scmp.lt.s32.totalorder %s473_s12, 2  ;;  %s114_s23 = sand.u32 1, %s469_s11  }
   0xe   : > { %p544_p11 = por %p88_p7, %p32_p0  ;;  %p548_p12 = por %p94_p8, %p38_p3 }
   0xf   : > { %s315_s24 = sshll.u32 %s473_s12, 7  ;;  %s314_s25 = sshll.u32 %s114_s23, 3 }
  0x10   : > { %s673_s21 = scalar_select %p544_p11, 1, 0 }
  0x11   : > { %s674_s22 = scalar_select %p548_p12, 1, 0 }
  0x12   : > { %s557_s28 = scalar_lea.hbm %s667_s0, %s315_s24  ;;  %s118_s29 = scalar_lea.vmem [#allocation2], %s314_s25 }
  0x13   : > { %s125_s30 = sshll.u32 %s118_s29, 4  ;;  %p561_p13 = pnand %p335_p10, %p533_p5  ;;  %s565_s30 = int_to_ptr.vmem [resolvable:$true] %s125_s30 }
  0x14   : > { %s115_s4 = scalar_lea.sflag [#allocation3], %s114_s23  ;;  %s377_s5 = scalar_lea.hbm %s557_s28, 128 }
  0x15   : > { %p378_p2 = scmp.ne.s32.totalorder %s557_s28, %s377_s5  ;;  %p379_p3 = pneg %p561_p13 }
  0x16   : > { %s382_s8 = scalar_lea.hbm %s667_s0, 256  ;;  %p383_p5 = scmp.lt.u32.totalorder %s557_s28, %s667_s0 }
  0x17   : > { %p380_p4 = pnand %p379_p3, %p378_p2  ;;  %p384_p8 = scmp.lt.u32.totalorder %s382_s8, %s377_s5 }
  0x18   : > { %p386_p9 = scmp.lt.u32.totalorder %s377_s5, %s557_s28 }
  0x19   : > { %p381_p7 = pneg %p380_p4  ;;  %p385_p10 = por %p384_p8, %p383_p5 }
  0x1b   : > { %p387_p0 = por %p386_p9, %p385_p10 }
  0x1d   : > { %p388_p1 = pnand %p387_p0, %p381_p7 }
  0x1f   : > { %391 = shalt.err (!%p388_p1)
}
  0x20   : > { %s392_s17 = scalar_lea.vmem %s565_s30, 128  ;;  %s475_s19 = smov [#allocation2]  }
  0x21   : > { %p393_p2 = scmp.ne.s32.totalorder %s565_s30, %s392_s17  ;;  %s397_s23 = sshll.u32 %s475_s19, 4  ;;  %s398_s23 = int_to_ptr.vmem [resolvable:$false] %s397_s23 }
  0x22   : > { %s399_s24 = scalar_lea.vmem %s398_s23, 256  ;;  %p400_p11 = scmp.lt.s32.totalorder %s565_s30, %s398_s23 }
  0x23   : > { %p395_p4 = pnand %p393_p2, %p379_p3  ;;  %p401_p5 = scmp.lt.s32.totalorder %s399_s24, %s392_s17 }
  0x25   : > { %p396_p12 = pneg %p395_p4  ;;  %p402_p8 = por %p401_p5, %p400_p11 }
  0x27   : > { %p403_p9 = pnand %p402_p8, %p396_p12 }
  0x29   : > { %406 = shalt.err (!%p403_p9)
}
  0x2a   : > { %330 = dma.hbm_to_vmem [thread:$0]  (!%p561_p13), %s557_s28, 128, %s565_s30, %s115_s4  }
  0x2b   : > { %p676_p0 = scmp.lt.s32.totalorder %s473_s12, 3  ;;  %p677_p1 = scmp.ge.s32.totalorder %s473_s12, 1 }
  0x2d   : > { %p137_p3 = pnand %p677_p1, %p676_p0 }
  0x2e   : > { %s599_s25 = sand.u32 (!%p137_p3), 1, %s465_s10  }
  0x2f   : > { %140 = sbr.rel (%p137_p3) target bundleno = 111 (0x6f), region = 28  ;;  %s317_s26 = sshll.u32 (!%p137_p3), %s599_s25, 3 }
  0x30   : > { %s143_s27 = scalar_lea.sflag (!%p137_p3), [#allocation3], %s599_s25  ;;  %s146_s29 = scalar_lea.vmem (!%p137_p3), [#allocation2], %s317_s26 }
  0x36   : > { %452 = dma.done.wait (%p537_p6), %s143_s27, 128  }
  0x37   : > { %454 = vsyncadd (%p537_p6), %s143_s27, 4294967168  ;;  %v175_v0 = vld [vmem:[%s146_s29] sm:$0xff]  ;;  %p170_p11 = scmp.lt.s32.totalorder %s515_s13, 1  ;;  %v173_v4 = vlaneseq  ;;  %v476_v17 = vmov 0.75   ;;  %v477_v21 = vmov 0   ;;  %s169_s20 = scalar_lea.vmem [#allocation5], %s317_s26 }
  0x38   : > { %v177_v1 = vand.u32 2147483647, %v175_v0  ;;  %v184_v11 = vsub.f32 0.0, %v175_v0  ;;  %vm192_vm0 = vcmp.ge.f32.partialorder %v175_v0, 0.0  ;;  %v188_v13 = vmax.f32 %v175_v0, 0.0  ;;  %s232_s5 = sshll.u32 %s169_s20, 4  ;;  %s620_s5 = int_to_ptr.vmem [resolvable:$true] %s232_s5 }
  0x39   : > { %s171_s28 = scalar_select %p170_p11, %s515_s13, 1  ;;  %v174_v5 = vshrl.u32 %v173_v4, 7 }
  0x3a   : > { %v178_v2 = vsub.f32 0.0, %v177_v1  ;;  %v185_v12 = vmax.f32 %v184_v11, 0.0  ;;  %s320_s6 = sshll.u32 %s515_s13, 7  ;;  %s219_s16 = scalar_lea.sflag [#allocation4], %s599_s25 }
  0x3b   : > { %s172_s4 = scalar_lea.vmem %s668_s1, %s171_s28  ;;  %v199_v8 = vsub.s32 0, %v174_v5  ;;  %s625_s14 = scalar_lea.hbm %s669_s2, %s320_s6 }
  0x3c   : > { %v179_v3 = vmul.f32 1.442695, %v178_v2  ;;  %v176_v9 = vld [vmem:[%s172_s4] sm:$0x1]  ;;  %s407_s17 = scalar_lea.vmem %s620_s5, 128  ;;  %p678_p12 = scmp.ne.s32.totalorder %s673_s21, 0 }
  0x3d   : > { %v200_v10 = vrot.slane %v176_v9, %v199_v8  ;;  %vm202_vm2 = vcmp.ge.s32.totalorder %v176_v9, 0  ;;  %p408_p6 = scmp.ne.s32.totalorder %s620_s5, %s407_s17  ;;  %s478_s13 = smov [#allocation5]  }
  0x3e   : > { %371 = vpow2.f32 %v179_v3  ;;  %v210_v22 = vsel %vm202_vm2, 1, %v477_v21  ;;  %s411_s19 = sshll.u32 %s478_s13, 4  ;;  %s412_s19 = int_to_ptr.vmem [resolvable:$false] %s411_s19 }
  0x3f   : > { %vm201_vm1 = vcmp.eq.s32.totalorder %v200_v10, %v174_v5  ;;  %v214_v29 = vrot.slane %v210_v22, %v199_v8  ;;  %p409_p13 = pnand %p408_p6, %p678_p12  ;;  %s413_s23 = scalar_lea.vmem %s412_s19, 256 }
  0x40   : > { %v205_v18 = vsel %vm201_vm1, 0.25, %v476_v17  ;;  %p414_p10 = scmp.lt.s32.totalorder %s620_s5, %s412_s19  ;;  %p415_p2 = scmp.lt.s32.totalorder %s413_s23, %s407_s17 }
  0x41   : > { %v206_v27 = vsub.f32 0.0, %v205_v18  ;;  %vm215_vm3 = vcmp.eq.s32.totalorder %v214_v29, 1  ;;  %p410_p7 = pneg %p409_p13 }
  0x42   : > { %p416_p4 = por %p415_p2, %p414_p10 }
  0x44   : > { %p417_p5 = pnand %p416_p4, %p410_p7 }
  0x48   : > { %v372_v6 = vpop.eup %371 }
  0x49   : > { %v181_v7 = vadd.f32 1.0, %v372_v6  ;;  %v193_v14 = vsel %vm192_vm0, 1.0, %v372_v6  ;;  %v195_v15 = vsel %vm192_vm0, %v372_v6, 1.0 }
  0x4b   : > { %373 = vlog2.f32 %v181_v7 }
  0x4c   : > { %375 = vrcp.f32 %v181_v7 }
  0x55   : > { %v374_v16 = vpop.eup %373 }
  0x56   : > { %v376_v19 = vpop.eup %375  ;;  %v183_v20 = vmul.f32 0.6931472, %v374_v16 }
  0x57   : > { %v194_v23 = vmul.f32 %v376_v19, %v193_v14  ;;  %v196_v24 = vmul.f32 %v376_v19, %v195_v15 }
  0x58   : > { %v186_v25 = vadd.f32 %v185_v12, %v183_v20  ;;  %v189_v26 = vadd.f32 %v188_v13, %v183_v20 }
  0x59   : > { %v203_v28 = vsel %vm201_vm1, %v196_v24, %v194_v23 }
  0x5a   : > { %v187_v30 = vsub.f32 0.0, %v186_v25  ;;  %v190_v31 = vsub.f32 0.0, %v189_v26  ;;  %v207_v32 = vmul.f32 %v203_v28, %v203_v28 }
  0x5c   : > { %v204_v33 = vsel %vm201_vm1, %v187_v30, %v190_v31  ;;  %v208_v34 = vmul.f32 %v207_v32, %v206_v27 }
  0x5e   : > { %v209_v35 = vmul.f32 %v208_v34, %v204_v33 }
  0x60   : > { %v216_v36 = vsel %vm215_vm3, %v209_v35, 0.0 }
  0x61   : > { %217 = vst [vmem:[%s169_s20] sm:$0xff] %v216_v36 }
  0x62   : > { %420 = shalt.err (!%p417_p5)
}
  0x63   : > { %s421_s24 = scalar_lea.hbm %s625_s14, 128  ;;  %s425_s27 = scalar_lea.hbm %s669_s2, 256 }
  0x64   : > { %p422_p8 = scmp.ne.s32.totalorder %s625_s14, %s421_s24  ;;  %p426_p1 = scmp.lt.u32.totalorder %s625_s14, %s669_s2 }
  0x65   : > { %p427_p3 = scmp.lt.u32.totalorder %s425_s27, %s421_s24  ;;  %p429_p6 = scmp.lt.u32.totalorder %s421_s24, %s625_s14 }
  0x66   : > { %p423_p9 = pnand %p422_p8, %p678_p12 }
  0x67   : > { %p428_p11 = por %p427_p3, %p426_p1 }
  0x68   : > { %p424_p0 = pneg %p423_p9 }
  0x69   : > { %p430_p13 = por %p429_p6, %p428_p11 }
  0x6b   : > { %p431_p7 = pnand %p430_p13, %p424_p0 }
  0x6d   : > { %434 = shalt.err (!%p431_p7)
}
  0x6e   : > { %325 = dma.vmem_to_hbm [thread:$0]  (%p678_p12), %s620_s5, 128, %s625_s14, %s219_s16  }
  0x6f PF: > { %s244_s30 = sand.u32 1, %s461_s9   ;;  %p679_p10 = scmp.ne.s32.totalorder %s674_s22, 0 }
  0x70   : > { %p680_p2 = scmp.ge.s32.totalorder %s473_s12, 2  ;;  %s245_s3 = scalar_lea.sflag [#allocation4], %s244_s30 }
  0x72   : > { %p332_p4 = pnand %p680_p2, %p679_p10 }
  0x74   : > { %456 = dma.done.wait (!%p332_p4), %s245_s3, 128  }
  0x75   : > { %458 = vsyncadd (!%p332_p4), %s245_s3, 4294967168  ;;  %p15_p5 = scmp.ge.s32.totalorder %s519_s15, 4   ;;  %s681_s9 = smov %s465_s10 }
  0x76   : > { %s682_s10 = smov %s469_s11  ;;  %s683_s11 = smov %s531_s18 }
  0x77   : > { %s684_s12 = smov %s519_s15  ;;  %17 = sbr.rel (!%p15_p5) target bundleno = 5 (0x5), region = 76 }
  0x7e   :  { %250 = vsyncpa [#allocation3], 1 }
  0x7f   :  { %252 = vsyncpa [#allocation3 + $0x1], 1 }
  0x80   :  { %253 = vsyncpa [#allocation4], 1 }
  0x81   :  { %255 = vsyncpa [#allocation4 + $0x1], 1 }

</bundles_post_ra>
